<compile_context>
chip_gen: v7x
topology: tpu7x:2x2x1
jax: 0.10.0
libtpu: 0.0.40
codegen_flags: <defaults>
</compile_context>

<pallas_src>
import math

import jax
import jax.numpy as jnp
from jax.experimental import pallas as pl
from jax.experimental.pallas import tpu as pltpu

LN_EPS = 1e-5


def linear_module_kernel(x_ref, gamma_ref, beta_ref, w_ref, b_ref, o_ref):
    # ---- load once; LN / bias math stays f32 --------------------------------
    x = x_ref[...].astype(jnp.float32)            # [TB, F]
    gamma = gamma_ref[...].astype(jnp.float32)    # [1, F]
    beta = beta_ref[...].astype(jnp.float32)      # [1, F]
    bias = b_ref[...].astype(jnp.float32)         # [1, O_pad]

    # ---- LayerNorm over the flattened feature (last) dim --------------------
    mean = jnp.mean(x, axis=-1, keepdims=True)
    diff = x - mean
    var = jnp.mean(diff * diff, axis=-1, keepdims=True)
    t = diff * jax.lax.rsqrt(var + LN_EPS)        # rsqrt -> EUP (free slot)
    t = t * gamma + beta

    # ---- Linear: y = t @ W.T + b  (W kept in PyTorch [out, in] layout) ------
    # Contraction on W's second axis goes straight to the MXU; bf16 inputs,
    # f32 accumulation.
    y = jax.lax.dot_general(
        t.astype(jnp.bfloat16), w_ref[...],
        dimension_numbers=(((1,), (1,)), ((), ())),
        preferred_element_type=jnp.float32)       # [TB, O_pad]
    y = y + bias

    # ---- activation (ReLU) ---------------------------------------------------
    o_ref[...] = jnp.maximum(y, 0.0).astype(o_ref.dtype)


def linear_module(x, gamma, beta, w, b, *, block_b=512):
    """x: [B, *in_shape]; w: [out_features, flat_features] (PyTorch layout)."""
    B = x.shape[0]
    x2 = x.reshape(B, -1)                         # Flatten
    F_in = x2.shape[1]
    O = w.shape[0]

    # TODO(synk): nn.Dropout with p>0 (training mode) not implemented; p=0 /
    # eval mode is the identity, which is what runs here.

    # Pad out_features up to a multiple of 128 -> lane-dense output stores.
    O_pad = max(128, ((O + 127) // 128) * 128)
    # bf16 weights for the MXU (halves weight DMA + VMEM; f32 accumulate).
    w_bf16 = w.astype(jnp.bfloat16)
    if O_pad != O:
        w_bf16 = jnp.pad(w_bf16, ((0, O_pad - O), (0, 0)))
        b_pad = jnp.pad(b, (0, O_pad - O))
    else:
        b_pad = b
    gamma2 = gamma.reshape(1, F_in)
    beta2 = beta.reshape(1, F_in)
    b2 = b_pad.reshape(1, O_pad)

    # Batch tile: full B when small (block == full dim is always legal),
    # else `block_b` rows (multiple of 8; biggest tile that comfortably fits).
    TB = B if B <= block_b else block_b
    grid = (pl.cdiv(B, TB),)

    # VMEM budget: double-buffered activations + resident (double-buffered)
    # weights/params, with headroom; capped at v7x physical (64 MiB).
    act_bytes = 2 * TB * F_in * 4 + 2 * TB * O_pad * 4
    wgt_bytes = 2 * (O_pad * F_in * 2 + 2 * F_in * 4 + O_pad * 4)
    vmem_limit = min(max(int(1.25 * (act_bytes + wgt_bytes)) + (4 << 20),
                         8 << 20), 64 << 20)

    cost = pl.CostEstimate(
        flops=2 * B * F_in * O_pad,
        transcendentals=B,                        # one rsqrt per row
        bytes_accessed=(B * F_in * x.dtype.itemsize
                        + O_pad * F_in * 2        # bf16 weights
                        + 2 * F_in * 4 + O_pad * 4
                        + B * O_pad * 4))

    out = pl.pallas_call(
        linear_module_kernel,
        out_shape=jax.ShapeDtypeStruct((B, O_pad), jnp.float32),  # .float()
        grid=grid,
        in_specs=[
            pl.BlockSpec((TB, F_in), lambda i: (i, 0)),    # x: tiled over B
            pl.BlockSpec((1, F_in), lambda i: (0, 0)),     # gamma (resident)
            pl.BlockSpec((1, F_in), lambda i: (0, 0)),     # beta  (resident)
            pl.BlockSpec((O_pad, F_in), lambda i: (0, 0)), # W     (resident)
            pl.BlockSpec((1, O_pad), lambda i: (0, 0)),    # bias  (resident)
        ],
        out_specs=pl.BlockSpec((TB, O_pad), lambda i: (i, 0)),
        compiler_params=pltpu.CompilerParams(
            dimension_semantics=("parallel",),             # rows independent
            vmem_limit_bytes=vmem_limit),
        cost_estimate=cost,
    )(x2, gamma2, beta2, w_bf16, b2)

    return out[:, :O] if O_pad != O else out


def reference(x, gamma, beta, w, b):
    B = x.shape[0]
    xf = x.reshape(B, -1).astype(jnp.float32)
    mean = jnp.mean(xf, axis=-1, keepdims=True)
    var = jnp.mean((xf - mean) ** 2, axis=-1, keepdims=True)
    t = (xf - mean) / jnp.sqrt(var + LN_EPS) * gamma + beta
    y = t @ w.T + b
    return jnp.maximum(y, 0.0)


if __name__ == "__main__":
    # x: [batch=2, channels=4, 16, 16] -> flat features 1024, out_features 128
    B, C, Hs, Ws = 2, 4, 16, 16
    F_in = C * Hs * Ws
    O = 128

    key = jax.random.PRNGKey(0)
    kx, kw, kb = jax.random.split(key, 3)

    x = jax.random.normal(kx, (B, C, Hs, Ws), dtype=jnp.float32)
    # LayerNorm params (PyTorch default init: ones / zeros)
    gamma = jnp.ones((F_in,), jnp.float32)
    beta = jnp.zeros((F_in,), jnp.float32)
    # Linear params (PyTorch-style uniform bound)
    bound = 1.0 / math.sqrt(F_in)
    w = jax.random.uniform(kw, (O, F_in), jnp.float32, -bound, bound)
    b = jax.random.uniform(kb, (O,), jnp.float32, -bound, bound)

    out = linear_module(x, gamma, beta, w, b)
    out = jax.block_until_ready(out)

    ref = reference(x, gamma, beta, w, b)
    assert out.shape == (B, O)
    # bf16 MXU inputs with f32 accumulation vs f32 reference -> loose tolerance
    assert jnp.allclose(out, ref, atol=3e-2, rtol=3e-2), \
        float(jnp.max(jnp.abs(out - ref)))

    print("KERNEL_OK")
</pallas_src>

<mosaic_0001>
module attributes {stable_mosaic.version = 11 : i64} {
  func.func @linear_module_kernel(%arg0: i32, %arg1: memref<2x1024xf32, #tpu.memory_space<vmem>>, %arg2: memref<1x1024xf32, #tpu.memory_space<vmem>>, %arg3: memref<1x1024xf32, #tpu.memory_space<vmem>>, %arg4: memref<128x1024xbf16, #tpu.memory_space<vmem>>, %arg5: memref<1x128xf32, #tpu.memory_space<vmem>>, %arg6: memref<2x128xf32, #tpu.memory_space<vmem>>) attributes {dimension_semantics = [#tpu.dimension_semantics<parallel>], iteration_bounds = array<i64: 1>, scalar_prefetch = 0 : i64, scratch_operands = 0 : i64, tpu.core_type = #tpu.core_type<tc>, window_params = [{transform_indices = @transform_0, window_bounds = array<i64: 2, 1024>}, {pipeline_mode = #tpu.pipeline_mode<synchronous>, transform_indices = @transform_1, window_bounds = array<i64: 1, 1024>}, {pipeline_mode = #tpu.pipeline_mode<synchronous>, transform_indices = @transform_2, window_bounds = array<i64: 1, 1024>}, {pipeline_mode = #tpu.pipeline_mode<synchronous>, transform_indices = @transform_3, window_bounds = array<i64: 128, 1024>}, {pipeline_mode = #tpu.pipeline_mode<synchronous>, transform_indices = @transform_4, window_bounds = array<i64: 1, 128>}, {transform_indices = @transform_5, window_bounds = array<i64: 2, 128>}]} {
    %c0 = arith.constant 0 : index
    %c0_0 = arith.constant 0 : index
    %0 = vector.load %arg1[%c0, %c0_0] : memref<2x1024xf32, #tpu.memory_space<vmem>>, vector<2x1024xf32>
    %c0_1 = arith.constant 0 : index
    %c0_2 = arith.constant 0 : index
    %1 = vector.load %arg2[%c0_1, %c0_2] : memref<1x1024xf32, #tpu.memory_space<vmem>>, vector<1x1024xf32>
    %c0_3 = arith.constant 0 : index
    %c0_4 = arith.constant 0 : index
    %2 = vector.load %arg3[%c0_3, %c0_4] : memref<1x1024xf32, #tpu.memory_space<vmem>>, vector<1x1024xf32>
    %c0_5 = arith.constant 0 : index
    %c0_6 = arith.constant 0 : index
    %3 = vector.load %arg5[%c0_5, %c0_6] : memref<1x128xf32, #tpu.memory_space<vmem>>, vector<1x128xf32>
    %cst = arith.constant dense<0.000000e+00> : vector<2xf32>
    %4 = vector.multi_reduction <add>, %0, %cst [1] : vector<2x1024xf32> to vector<2xf32>
    %5 = vector.shape_cast %4 : vector<2xf32> to vector<2x1xf32>
    %cst_7 = arith.constant 1.024000e+03 : f32
    %6 = vector.broadcast %cst_7 : f32 to vector<2x1xf32>
    %7 = arith.divf %5, %6 : vector<2x1xf32>
    %8 = vector.broadcast %7 : vector<2x1xf32> to vector<2x1024xf32>
    %9 = arith.subf %0, %8 : vector<2x1024xf32>
    %10 = arith.mulf %9, %9 : vector<2x1024xf32>
    %cst_8 = arith.constant dense<0.000000e+00> : vector<2xf32>
    %11 = vector.multi_reduction <add>, %10, %cst_8 [1] : vector<2x1024xf32> to vector<2xf32>
    %12 = vector.shape_cast %11 : vector<2xf32> to vector<2x1xf32>
    %cst_9 = arith.constant 1.024000e+03 : f32
    %13 = vector.broadcast %cst_9 : f32 to vector<2x1xf32>
    %14 = arith.divf %12, %13 : vector<2x1xf32>
    %cst_10 = arith.constant 9.99999974E-6 : f32
    %15 = vector.broadcast %cst_10 : f32 to vector<2x1xf32>
    %16 = arith.addf %14, %15 : vector<2x1xf32>
    %17 = math.rsqrt %16 : vector<2x1xf32>
    %18 = vector.broadcast %17 : vector<2x1xf32> to vector<2x1024xf32>
    %19 = arith.mulf %9, %18 : vector<2x1024xf32>
    %20 = vector.broadcast %1 : vector<1x1024xf32> to vector<2x1024xf32>
    %21 = arith.mulf %19, %20 : vector<2x1024xf32>
    %22 = vector.broadcast %2 : vector<1x1024xf32> to vector<2x1024xf32>
    %23 = arith.addf %21, %22 : vector<2x1024xf32>
    %24 = arith.truncf %23 : vector<2x1024xf32> to vector<2x1024xbf16>
    %c0_11 = arith.constant 0 : index
    %c0_12 = arith.constant 0 : index
    %25 = vector.load %arg4[%c0_11, %c0_12] : memref<128x1024xbf16, #tpu.memory_space<vmem>>, vector<128x1024xbf16>
    %cst_13 = arith.constant dense<0.000000e+00> : vector<2x128xf32>
    %26 = tpu.matmul %24, %25, %cst_13 {dimension_numbers = #tpu.dot_dimension_numbers<[1], [1], [0], [0], [0, 0, 1, 0], [], []>} : vector<2x1024xbf16>, vector<128x1024xbf16>, vector<2x128xf32> -> vector<2x128xf32>
    %27 = vector.broadcast %3 : vector<1x128xf32> to vector<2x128xf32>
    %28 = arith.addf %26, %27 : vector<2x128xf32>
    %cst_14 = arith.constant 0.000000e+00 : f32
    %29 = vector.broadcast %cst_14 : f32 to vector<2x128xf32>
    %30 = arith.maximumf %28, %29 : vector<2x128xf32>
    %c0_15 = arith.constant 0 : index
    %c0_16 = arith.constant 0 : index
    %31 = vector.load %arg6[%c0_15, %c0_16] : memref<2x128xf32, #tpu.memory_space<vmem>>, vector<2x128xf32>
    tpu.vector_store %arg6[%c0_15, %c0_16], %30 {strides = array<i32>} : memref<2x128xf32, #tpu.memory_space<vmem>>, vector<2x128xf32>,
    return
  }
  func.func @transform_0(%arg0: i32) -> (i32, i32) {
    %c0_i32 = arith.constant 0 : i32
    %c0_i32_0 = arith.constant 0 : i32
    return %arg0, %c0_i32 : i32, i32
  }
  func.func @transform_1(%arg0: i32) -> (i32, i32) {
    %c0_i32 = arith.constant 0 : i32
    %c0_i32_0 = arith.constant 0 : i32
    %c0_i32_1 = arith.constant 0 : i32
    return %c0_i32, %c0_i32_0 : i32, i32
  }
  func.func @transform_2(%arg0: i32) -> (i32, i32) {
    %c0_i32 = arith.constant 0 : i32
    %c0_i32_0 = arith.constant 0 : i32
    %c0_i32_1 = arith.constant 0 : i32
    return %c0_i32, %c0_i32_0 : i32, i32
  }
  func.func @transform_3(%arg0: i32) -> (i32, i32) {
    %c0_i32 = arith.constant 0 : i32
    %c0_i32_0 = arith.constant 0 : i32
    %c0_i32_1 = arith.constant 0 : i32
    return %c0_i32, %c0_i32_0 : i32, i32
  }
  func.func @transform_4(%arg0: i32) -> (i32, i32) {
    %c0_i32 = arith.constant 0 : i32
    %c0_i32_0 = arith.constant 0 : i32
    %c0_i32_1 = arith.constant 0 : i32
    return %c0_i32, %c0_i32_0 : i32, i32
  }
  func.func @transform_5(%arg0: i32) -> (i32, i32) {
    %c0_i32 = arith.constant 0 : i32
    %c0_i32_0 = arith.constant 0 : i32
    return %arg0, %c0_i32 : i32, i32
  }
}

</mosaic_0001>

<bundles_post_ra>
// kernel: tpu_custom_call.1
= control target key start
LH: loop header
LB: loop body
LE: loop exit
PB: predicated region body
PF: predicated region fallthrough
CT: control target
= control target key end

     0   :  { %10 = vsyncpa [#allocation3], 0  ;;  %s1416_s0 = inlined_call_operand.hbm [shape: f32[2,1024], index: 0, kind: input, shape index: {}]   ;;  %s1417_s1 = inlined_call_operand.hbm [shape: f32[1,1024], index: 1, kind: input, shape index: {}]   ;;  %s1418_s2 = inlined_call_operand.hbm [shape: f32[1,1024], index: 2, kind: input, shape index: {}]   ;;  %s1419_s3 = inlined_call_operand.hbm [shape: bf16[128,1024], index: 3, kind: input, shape index: {}]   ;;  %s1420_s4 = inlined_call_operand.vmem [shape: f32[1,128], index: 4, kind: input, shape index: {}]   ;;  %s1421_s5 = inlined_call_operand.hbm [shape: f32[2,128], index: 5, kind: output, shape index: {}]  }
   0x1   :  { %11 = vsyncpa [#allocation6], 0 }
   0x2   :  { %12 = vsyncpa [#allocation9], 0 }
   0x3   :  { %13 = vsyncpa [#allocation4], 0  ;;  %s1197_s18 = smov [#allocation5]   ;;  %s1198_s20 = smov [#allocation2]  }
   0x4   :  { %s30_s19 = sshll.u32 %s1197_s18, 4  ;;  %s20_s21 = sshll.u32 %s1198_s20, 4  ;;  %s31_s19 = int_to_ptr.vmem [resolvable:$true] %s30_s19  ;;  %s21_s21 = int_to_ptr.vmem [resolvable:$true] %s20_s21 }
   0x5   :  { %s1079_s24 = scalar_lea.hbm %s1417_s1, 128 }
   0x6   :  { %p1080_p0 = scmp.ne.s32.totalorder %s1417_s1, %s1079_s24  ;;  %p1083_p1 = scmp.lt.u32.totalorder %s1079_s24, %s1417_s1 }
   0x8   :  { %p1085_p2 = pnand %p1083_p1, %p1080_p0 }
   0xa   :  { %1088 = shalt.err (!%p1085_p2)
}
   0xb   :  { %s1089_s29 = scalar_lea.vmem %s31_s19, 128  ;;  %p1094_p4 = scmp.lt.s32.totalorder %s31_s19, %s31_s19 }
   0xc   :  { %p1090_p3 = scmp.ne.s32.totalorder %s31_s19, %s1089_s29  ;;  %p1095_p5 = scmp.lt.s32.totalorder %s1089_s29, %s1089_s29 }
   0xe   :  { %p1096_p6 = por %p1095_p5, %p1094_p4 }
  0x10   :  { %p1097_p7 = pnand %p1096_p6, %p1090_p3 }
  0x12   :  { %1100 = shalt.err (!%p1097_p7)
}
  0x13   :  { %33 = dma.hbm_to_vmem [thread:$0]  %s1417_s1, 128, %s31_s19, [#allocation6]  }
  0x14   :  { %s1101_s9 = scalar_lea.hbm %s1416_s0, 256 }
  0x15   :  { %p1102_p8 = scmp.ne.s32.totalorder %s1416_s0, %s1101_s9  ;;  %p1105_p9 = scmp.lt.u32.totalorder %s1101_s9, %s1416_s0 }
  0x17   :  { %p1107_p10 = pnand %p1105_p9, %p1102_p8 }
  0x19   :  { %1110 = shalt.err (!%p1107_p10)
}
  0x1a   :  { %s1111_s14 = scalar_lea.vmem %s21_s21, 256  ;;  %p1116_p12 = scmp.lt.s32.totalorder %s21_s21, %s21_s21 }
  0x1b   :  { %p1112_p11 = scmp.ne.s32.totalorder %s21_s21, %s1111_s14  ;;  %p1117_p13 = scmp.lt.s32.totalorder %s1111_s14, %s1111_s14 }
  0x1d   :  { %p1118_p0 = por %p1117_p13, %p1116_p12 }
  0x1f   :  { %p1119_p1 = pnand %p1118_p0, %p1112_p11 }
  0x21   :  { %1122 = shalt.err (!%p1119_p1)
}
  0x22   :  { %23 = dma.hbm_to_vmem [thread:$0]  %s1416_s0, 256, %s21_s21, [#allocation3]  }
  0x23   :  { %s1199_s16 = smov [#allocation7]   ;;  %s1200_s18 = smov [#allocation8]  }
  0x24   :  { %s40_s17 = sshll.u32 %s1199_s16, 4  ;;  %s49_s19 = sshll.u32 %s1200_s18, 4  ;;  %s41_s17 = int_to_ptr.vmem [resolvable:$true] %s40_s17  ;;  %s1260_s19 = int_to_ptr.vmem [resolvable:$true] %s49_s19 }
  0x25   :  { %s1123_s23 = scalar_lea.hbm %s1418_s2, 128 }
  0x26   :  { %p1124_p2 = scmp.ne.s32.totalorder %s1418_s2, %s1123_s23  ;;  %p1127_p3 = scmp.lt.u32.totalorder %s1123_s23, %s1418_s2 }
  0x28   :  { %p1129_p4 = pnand %p1127_p3, %p1124_p2 }
  0x2a   :  { %1132 = shalt.err (!%p1129_p4)
}
  0x2b   :  { %s1133_s0 = scalar_lea.vmem %s41_s17, 128  ;;  %p1138_p6 = scmp.lt.s32.totalorder %s41_s17, %s41_s17 }
  0x2c   :  { %p1134_p5 = scmp.ne.s32.totalorder %s41_s17, %s1133_s0  ;;  %p1139_p7 = scmp.lt.s32.totalorder %s1133_s0, %s1133_s0 }
  0x2e   :  { %p1140_p8 = por %p1139_p7, %p1138_p6 }
  0x30   :  { %p1141_p9 = pnand %p1140_p8, %p1134_p5 }
  0x32   :  { %1144 = shalt.err (!%p1141_p9)
}
  0x33   :  { %43 = dma.hbm_to_vmem [thread:$0]  %s1418_s2, 128, %s41_s17, [#allocation6]  }
  0x34   :  { %s1145_s6 = scalar_lea.hbm %s1419_s3, 8192 }
  0x35   :  { %p1146_p10 = scmp.ne.s32.totalorder %s1419_s3, %s1145_s6  ;;  %p1149_p11 = scmp.lt.u32.totalorder %s1145_s6, %s1419_s3 }
  0x37   :  { %p1151_p12 = pnand %p1149_p11, %p1146_p10 }
  0x39   :  { %1154 = shalt.err (!%p1151_p12)
}
  0x3a   :  { %s1155_s11 = scalar_lea.vmem %s1260_s19, 8192  ;;  %p1160_p0 = scmp.lt.s32.totalorder %s1260_s19, %s1260_s19 }
  0x3b   :  { %p1156_p13 = scmp.ne.s32.totalorder %s1260_s19, %s1155_s11  ;;  %p1161_p1 = scmp.lt.s32.totalorder %s1155_s11, %s1155_s11 }
  0x3d   :  { %p1162_p2 = por %p1161_p1, %p1160_p0 }
  0x3f   :  { %p1163_p3 = pnand %p1162_p2, %p1156_p13 }
  0x41   :  { %1166 = shalt.err (!%p1163_p3)
}
  0x42   :  { %s1201_s2 = smov 512   ;;  %s1202_s12 = smov 32  }
  0x43   :  { %55 = dma.hbm_to_vmem [thread:$0]  %s1419_s3, 8192, %s1260_s19, [#allocation9], %s1201_s2, %s1201_s2, %s1202_s12  }
  0x44   :  { %1189 = dma.done.wait [#allocation3], 256  }
  0x45   :  { %1190 = vsyncadd [#allocation3], 4294967040 }
  0x46   :  { %1191 = dma.done.wait [#allocation6], 256  }
  0x47   :  { %1192 = vsyncadd [#allocation6], 4294967040 }
  0x48   :  { %1193 = dma.done.wait [#allocation9], 8192  }
  0x49   :  { %1194 = vsyncadd [#allocation9], 4294959104  ;;  %v82_v0 = vlaneseq  ;;  %v1203_v1 = vmov 1983009808   ;;  %v1296_v6 = vld [vmem:[#allocation2] sm:$0xff]  ;;  %v1298_v7 = vld [vmem:[#allocation2 + $0x8] sm:$0xff] }
  0x4a   :  { %v80_v2 = vunpack.c.l.s4 %v1203_v1  ;;  %v78_v8 = vcombine.high %v1296_v6, %v1296_v6  ;;  %vm120_vm0 = vcmask 1041408   ;;  %v95_v12 = vcombine.high %v1298_v7, %v1298_v7  ;;  %v422_v33 = vld [vmem:[#allocation8] sm:$0xff]  ;;  %v424_v35 = vld [vmem:[#allocation8 + $0x10] sm:$0xff]  ;;  %s1205_s15 = smov [#allocation10]  }
  0x4b   :  { %v1291_v3 = vshrl.u32 %v82_v0, 7  ;;  %v426_v34 = vld [vmem:[#allocation8 + $0x20] sm:$0xff]  ;;  %v428_v37 = vld [vmem:[#allocation8 + $0x30] sm:$0xff]  ;;  %s980_s16 = sshll.u32 %s1205_s15, 4  ;;  %s981_s16 = int_to_ptr.vmem [resolvable:$true] %s980_s16 }
  0x4c   :  { %v81_v4 = vunpack.c.0.s8 %v80_v2  ;;  %v993_v36 = vcombine.high %v422_v33, %v426_v34  ;;  %v992_v38 = vcombine.low %v422_v33, %v426_v34  ;;  %v430_v39 = vld [vmem:[#allocation8 + $0x40] sm:$0xff]  ;;  %v997_v41 = vcombine.high %v424_v35, %v428_v37  ;;  %v432_v44 = vld [vmem:[#allocation8 + $0x50] sm:$0xff]  ;;  %s1167_s17 = scalar_lea.vmem %s981_s16, 32  ;;  %p1172_p5 = scmp.lt.s32.totalorder %s981_s16, %s981_s16 }
  0x4d   :  { %v434_v40 = vld [vmem:[#allocation8 + $0x60] sm:$0xff]  ;;  %v996_v42 = vcombine.low %v424_v35, %v428_v37  ;;  %v436_v45 = vld [vmem:[#allocation8 + $0x70] sm:$0xff]  ;;  %p1168_p4 = scmp.ne.s32.totalorder %s981_s16, %s1167_s17  ;;  %p1173_p6 = scmp.lt.s32.totalorder %s1167_s17, %s1167_s17 }
  0x4e   :  { %v1294_v5 = vsub.s32 %v81_v4, %v1291_v3  ;;  %v1001_v43 = vcombine.high %v430_v39, %v434_v40  ;;  %812 = vmatprep.subr.bf16.mxu1 %v993_v36  ;;  %v1005_v46 = vcombine.high %v432_v44, %v436_v45  ;;  %892 = vmatprep.subr.bf16.mxu0 %v997_v41  ;;  %v438_v47 = vld [vmem:[#allocation8 + $0x80] sm:$0xff]  ;;  %v440_v49 = vld [vmem:[#allocation8 + $0x90] sm:$0xff] }
  0x4f   :  { %813 = vmatpush1.bf16.xpose.msra.mxu1 %v992_v38  ;;  %893 = vmatpush1.bf16.xpose.msra.mxu0 %v996_v42  ;;  %v442_v48 = vld [vmem:[#allocation8 + $0xa0] sm:$0xff]  ;;  %v444_v50 = vld [vmem:[#allocation8 + $0xb0] sm:$0xff]  ;;  %v1000_v51 = vcombine.low %v430_v39, %v434_v40  ;;  %v1004_v52 = vcombine.low %v432_v44, %v436_v45  ;;  %p1174_p7 = por %p1173_p6, %p1172_p5 }
  0x50   :  { %v85_v9 = vrot.slane %v1296_v6, %v1294_v5  ;;  %v92_v10 = vrot.slane %v78_v8, %v1294_v5  ;;  %v102_v13 = vrot.slane %v1298_v7, %v1294_v5  ;;  %v109_v19 = vrot.slane %v95_v12, %v1294_v5  ;;  %814 = vmatprep.subr.bf16.mxu1 %v1001_v43  ;;  %v446_v55 = vld [vmem:[#allocation8 + $0xc0] sm:$0xff]  ;;  %v448_v57 = vld [vmem:[#allocation8 + $0xd0] sm:$0xff] }
  0x51   :  { %894 = vmatprep.subr.bf16.mxu0 %v1005_v46  ;;  %v1009_v53 = vcombine.high %v438_v47, %v442_v48  ;;  %v1013_v54 = vcombine.high %v440_v49, %v444_v50  ;;  %v450_v56 = vld [vmem:[#allocation8 + $0xe0] sm:$0xff]  ;;  %v452_v58 = vld [vmem:[#allocation8 + $0xf0] sm:$0xff]  ;;  %v1008_v59 = vcombine.low %v438_v47, %v442_v48  ;;  %v1012_v60 = vcombine.low %v440_v49, %v444_v50  ;;  %p1175_p8 = pnand %p1174_p7, %p1168_p4 }
  0x52   :  { %v93_v11 = vcombine.high %v85_v9, %v85_v9  ;;  %v121_v14 = vsel %vm120_vm0, %v85_v9, 0.0  ;;  %v94_v15 = vcombine.high %v92_v10, %v92_v10  ;;  %v124_v17 = vsel %vm120_vm0, %v92_v10, 0.0  ;;  %v454_v63 = vld [vmem:[#allocation8 + $0x100] sm:$0xff]  ;;  %v456_v1 = vld [vmem:[#allocation8 + $0x110] sm:$0xff] }
  0x53   :  { %v110_v20 = vcombine.high %v102_v13, %v102_v13  ;;  %v128_v23 = vsel %vm120_vm0, %v102_v13, 0.0  ;;  %v111_v25 = vcombine.high %v109_v19, %v109_v19  ;;  %v132_v28 = vsel %vm120_vm0, %v109_v19, 0.0  ;;  %v458_v0 = vld [vmem:[#allocation8 + $0x120] sm:$0xff]  ;;  %v460_v2 = vld [vmem:[#allocation8 + $0x130] sm:$0xff] }
  0x54   :  { %v122_v16 = vsel %vm120_vm0, %v93_v11, 0.0  ;;  %v126_v21 = vsel %vm120_vm0, %v94_v15, 0.0  ;;  %v1017_v61 = vcombine.high %v446_v55, %v450_v56  ;;  %v1021_v62 = vcombine.high %v448_v57, %v452_v58  ;;  %v462_v47 = vld [vmem:[#allocation8 + $0x140] sm:$0xff]  ;;  %v464_v49 = vld [vmem:[#allocation8 + $0x150] sm:$0xff] }
  0x55   :  { %v123_v18 = vadd.f32 %v122_v16, %v121_v14  ;;  %v130_v26 = vsel %vm120_vm0, %v110_v20, 0.0  ;;  %v134_v30 = vsel %vm120_vm0, %v111_v25, 0.0  ;;  %v1016_v4 = vcombine.low %v446_v55, %v450_v56  ;;  %v466_v48 = vld [vmem:[#allocation8 + $0x160] sm:$0xff] }
  0x56   :  { %v1020_v8 = vcombine.low %v448_v57, %v452_v58  ;;  %v1025_v9 = vcombine.high %v454_v63, %v458_v0  ;;  %v1029_v10 = vcombine.high %v456_v1, %v460_v2  ;;  %v1024_v11 = vcombine.low %v454_v63, %v458_v0  ;;  %v472_v58 = vld [vmem:[#allocation8 + $0x190] sm:$0xff] }
  0x57   :  { %v125_v22 = vadd.f32 %v124_v17, %v123_v18  ;;  %815 = vmatpush1.bf16.xpose.msra.mxu1 %v1000_v51  ;;  %895 = vmatpush1.bf16.xpose.msra.mxu0 %v1004_v52  ;;  %v1028_v12 = vcombine.low %v456_v1, %v460_v2  ;;  %v1204_v13 = vmov 269488144   ;;  %v1033_v50 = vcombine.high %v462_v47, %v466_v48  ;;  %v468_v51 = vld [vmem:[#allocation8 + $0x170] sm:$0xff] }
  0x58   :  { %816 = vmatprep.subr.bf16.mxu1 %v1009_v53  ;;  %896 = vmatprep.subr.bf16.mxu0 %v1013_v54  ;;  %v142_v14 = vunpack.c.l.s4 %v1204_v13  ;;  %v1032_v52 = vcombine.low %v462_v47, %v466_v48  ;;  %v470_v53 = vld [vmem:[#allocation8 + $0x180] sm:$0xff]  ;;  %v1037_v55 = vcombine.high %v464_v49, %v468_v51  ;;  %v1036_v56 = vcombine.low %v464_v49, %v468_v51  ;;  %v480_v63 = vld [vmem:[#allocation8 + $0x1d0] sm:$0xff]  ;;  %v1348_v13 = vld [vmem:[#allocation8 + $0x18] sm:$0xff] }
  0x59   :  { %v127_v24 = vadd.f32 %v126_v21, %v125_v22  ;;  %v474_v54 = vld [vmem:[#allocation8 + $0x1a0] sm:$0xff]  ;;  %v484_v0 = vld [vmem:[#allocation8 + $0x1f0] sm:$0xff] }
  0x5a   :  { %v143_v15 = vunpack.c.0.s8 %v142_v14  ;;  %v1041_v57 = vcombine.high %v470_v53, %v474_v54  ;;  %v1040_v1 = vcombine.low %v470_v53, %v474_v54 }
  0x5b   :  { %v129_v27 = vadd.f32 %v128_v23, %v127_v24 }
  0x5c   :  { %v1319_v16 = vsub.s32 %v143_v15, %v1291_v3  ;;  %v1352_v15 = vld [vmem:[#allocation8 + $0x38] sm:$0xff] }
  0x5d   :  { %v131_v29 = vadd.f32 %v130_v26, %v129_v27 }
  0x5f   :  { %v133_v31 = vadd.f32 %v132_v28, %v131_v29  ;;  %817 = vmatpush1.bf16.xpose.msra.mxu1 %v1008_v59  ;;  %897 = vmatpush1.bf16.xpose.msra.mxu0 %v1012_v60  ;;  %v476_v59 = vld [vmem:[#allocation8 + $0x1b0] sm:$0xff] }
  0x60   :  { %818 = vmatprep.subr.bf16.mxu1 %v1017_v61  ;;  %898 = vmatprep.subr.bf16.mxu0 %v1021_v62  ;;  %v1045_v60 = vcombine.high %v472_v58, %v476_v59  ;;  %v478_v61 = vld [vmem:[#allocation8 + $0x1c0] sm:$0xff]  ;;  %v1044_v2 = vcombine.low %v472_v58, %v476_v59 }
  0x61   :  { %v135_v32 = vadd.f32 %v134_v30, %v133_v31  ;;  %v482_v62 = vld [vmem:[#allocation8 + $0x1e0] sm:$0xff] }
  0x63   :  { %136 = vadd.xlane.f32.xlu0 %v135_v32 }
  0x67   :  { %819 = vmatpush1.bf16.xpose.msra.mxu1 %v1016_v4  ;;  %899 = vmatpush1.bf16.xpose.msra.mxu0 %v1020_v8  ;;  %v1049_v4 = vcombine.high %v478_v61, %v482_v62  ;;  %v1053_v8 = vcombine.high %v480_v63, %v484_v0 }
  0x68   :  { %820 = vmatprep.subr.bf16.mxu1 %v1025_v9  ;;  %900 = vmatprep.subr.bf16.mxu0 %v1029_v10  ;;  %v1048_v9 = vcombine.low %v478_v61, %v482_v62  ;;  %v1052_v10 = vcombine.low %v480_v63, %v484_v0 }
  0x6f   :  { %821 = vmatpush1.bf16.xpose.msra.mxu1 %v1024_v11  ;;  %901 = vmatpush1.bf16.xpose.msra.mxu0 %v1028_v12  ;;  %v1344_v11 = vld [vmem:[#allocation8 + $0x8] sm:$0xff] }
  0x70   :  { %822 = vmatprep.subr.bf16.mxu1 %v1033_v50  ;;  %902 = vmatprep.subr.bf16.mxu0 %v1037_v55  ;;  %v1346_v12 = vld [vmem:[#allocation8 + $0x28] sm:$0xff] }
  0x71   :  { %v995_v14 = vcombine.high %v1344_v11, %v1346_v12 }
  0x77   :  { %823 = vmatpush1.bf16.xpose.msra.mxu1 %v1032_v52  ;;  %903 = vmatpush1.bf16.xpose.msra.mxu0 %v1036_v56 }
  0x78   :  { %824 = vmatprep.subr.bf16.mxu1 %v1041_v57  ;;  %904 = vmatprep.subr.bf16.mxu0 %v1045_v60 }
  0x7f   :  { %825 = vmatpush1.bf16.xpose.msra.mxu1 %v1040_v1  ;;  %905 = vmatpush1.bf16.xpose.msra.mxu0 %v1044_v2 }
  0x80   :  { %826 = vmatprep.subr.bf16.mxu1 %v1049_v4  ;;  %906 = vmatprep.subr.bf16.mxu0 %v1053_v8 }
  0x87   :  { %827 = vmatpush1.bf16.xpose.msra.mxu1 %v1048_v9  ;;  %907 = vmatpush1.bf16.xpose.msra.mxu0 %v1052_v10 }
  0x88   :  { %852 = vmatprep.subr.bf16.mxu1 %v995_v14 }
  0xf0   :  { %v137_v17 = vpop.xlane.xlu0 %136 }
  0xf1   :  { %v139_v18 = vmul.f32 0.0009765625, %v137_v17  ;;  %v994_v17 = vcombine.low %v1344_v11, %v1346_v12  ;;  %v447_v11 = vld [vmem:[#allocation8 + $0xc8] sm:$0xff] }
  0xf2   :  { %v451_v12 = vld [vmem:[#allocation8 + $0xe8] sm:$0xff] }
  0xf3   :  { %v147_v19 = vrot.slane %v139_v18, %v1319_v16  ;;  %v998_v18 = vcombine.low %v1348_v13, %v1352_v15 }
  0xf5   :  { %v1323_v20 = vsub.f32 %v1296_v6, %v147_v19  ;;  %v1326_v21 = vsub.f32 %v1298_v7, %v147_v19  ;;  %v999_v19 = vcombine.high %v1348_v13, %v1352_v15  ;;  %v449_v13 = vld [vmem:[#allocation8 + $0xd8] sm:$0xff] }
  0xf6   :  { %v453_v15 = vld [vmem:[#allocation8 + $0xf8] sm:$0xff] }
  0xf7   :  { %v151_v22 = vmul.f32 %v1323_v20, %v1323_v20  ;;  %v152_v23 = vmul.f32 %v1326_v21, %v1326_v21  ;;  %932 = vmatprep.subr.bf16.mxu0 %v999_v19 }
  0xf9   :  { %v155_v24 = vcombine.high %v151_v22, %v151_v22  ;;  %v162_v25 = vrot.slane %v151_v22, %v1294_v5  ;;  %v179_v28 = vrot.slane %v152_v23, %v1294_v5  ;;  %v172_v30 = vcombine.high %v152_v23, %v152_v23 }
  0xfa   :  { %v231_v22 = vsub.s32 0, %v1291_v3  ;;  %v235_v23 = vsub.s32 1, %v1291_v3 }
  0xfb   :  { %v169_v26 = vrot.slane %v155_v24, %v1294_v5  ;;  %v170_v27 = vcombine.high %v162_v25, %v162_v25  ;;  %v197_v6 = vsel %vm120_vm0, %v162_v25, 0.0  ;;  %v186_v34 = vrot.slane %v172_v30, %v1294_v5  ;;  %v73_v24 = vld [vmem:[#allocation5] sm:$0xff] }
  0xfc   :  { %v187_v35 = vcombine.high %v179_v28, %v179_v28  ;;  %v204_v38 = vsel %vm120_vm0, %v179_v28, 0.0  ;;  %v239_v25 = vsub.s32 2, %v1291_v3 }
  0xfd   :  { %v198_v29 = vsel %vm120_vm0, %v170_v27, 0.0  ;;  %v171_v7 = vcombine.high %v169_v26, %v169_v26  ;;  %v200_v32 = vsel %vm120_vm0, %v169_v26, 0.0  ;;  %v188_v40 = vcombine.high %v186_v34, %v186_v34 }
  0xfe   :  { %v199_v31 = vadd.f32 %v198_v29, %v197_v6  ;;  %v206_v41 = vsel %vm120_vm0, %v187_v35, 0.0  ;;  %v208_v43 = vsel %vm120_vm0, %v186_v34, 0.0  ;;  %v243_v26 = vsub.s32 3, %v1291_v3 }
  0xff   :  { %v202_v36 = vsel %vm120_vm0, %v171_v7, 0.0  ;;  %v210_v45 = vsel %vm120_vm0, %v188_v40, 0.0  ;;  %v247_v27 = vsub.s32 4, %v1291_v3  ;;  %v251_v6 = vsub.s32 5, %v1291_v3 }
 0x100   :  { %v201_v33 = vadd.f32 %v200_v32, %v199_v31  ;;  %v255_v29 = vsub.s32 6, %v1291_v3  ;;  %v259_v7 = vsub.s32 7, %v1291_v3  ;;  %v74_v31 = vld [vmem:[#allocation7] sm:$0xff]  ;;  %v232_v32 = vrot.slane %v73_v24, %v231_v22 }
 0x101   :  { %v240_v35 = vrot.slane %v73_v24, %v239_v25 }
 0x102   :  { %v203_v37 = vadd.f32 %v202_v36, %v201_v33  ;;  %v236_v33 = vrot.slane %v73_v24, %v235_v23  ;;  %v244_v36 = vrot.slane %v73_v24, %v243_v26  ;;  %v256_v40 = vrot.slane %v73_v24, %v255_v29 }
 0x103   :  { %v327_v47 = vrot.slane %v74_v31, %v255_v29  ;;  %v331_v3 = vrot.slane %v74_v31, %v259_v7  ;;  %v431_v29 = vld [vmem:[#allocation8 + $0x48] sm:$0xff] }
 0x104   :  { %v205_v39 = vadd.f32 %v204_v38, %v203_v37  ;;  %v248_v37 = vrot.slane %v73_v24, %v247_v27  ;;  %v303_v38 = vrot.slane %v74_v31, %v231_v22  ;;  %v261_v48 = vcombine.low %v232_v32, %v236_v33 }
 0x105   :  { %v262_v49 = vcombine.low %v240_v35, %v244_v36  ;;  %v350_v55 = vcombine.low %v327_v47, %v331_v3 }
 0x106   :  { %v207_v42 = vadd.f32 %v206_v41, %v205_v39  ;;  %v252_v39 = vrot.slane %v73_v24, %v251_v6  ;;  %v260_v41 = vrot.slane %v73_v24, %v259_v7  ;;  %v269_v56 = vrot.slane %v261_v48, %v1294_v5 }
 0x107   :  { %v276_v57 = vrot.slane %v262_v49, %v1294_v5  ;;  %v364_v63 = vrot.slane %v350_v55, %v1294_v5  ;;  %v1019_v48 = vcombine.high %v447_v11, %v451_v12  ;;  %v1023_v49 = vcombine.high %v449_v13, %v453_v15 }
 0x108   :  { %v209_v44 = vadd.f32 %v208_v43, %v207_v42  ;;  %v307_v42 = vrot.slane %v74_v31, %v235_v23  ;;  %v311_v43 = vrot.slane %v74_v31, %v239_v25  ;;  %v278_v50 = vcombine.low %v248_v37, %v252_v39 }
 0x109   :  { %v279_v51 = vcombine.low %v256_v40, %v260_v41  ;;  %v277_v2 = vcombine.low %v269_v56, %v276_v57  ;;  %v439_v41 = vld [vmem:[#allocation8 + $0x88] sm:$0xff]  ;;  %v1022_v55 = vcombine.low %v449_v13, %v453_v15 }
 0x10a   :  { %v211_v46 = vadd.f32 %v210_v45, %v209_v44  ;;  %v315_v44 = vrot.slane %v74_v31, %v243_v26  ;;  %v319_v45 = vrot.slane %v74_v31, %v247_v27  ;;  %v332_v52 = vcombine.low %v303_v38, %v307_v42  ;;  %v443_v42 = vld [vmem:[#allocation8 + $0xa8] sm:$0xff] }
 0x10b   :  { %v286_v58 = vrot.slane %v278_v50, %v1294_v5  ;;  %v293_v59 = vrot.slane %v279_v51, %v1294_v5  ;;  %v1011_v47 = vcombine.high %v439_v41, %v443_v42  ;;  %v455_v50 = vld [vmem:[#allocation8 + $0x108] sm:$0xff] }
 0x10c   :  { %212 = vadd.xlane.f32.xlu0 %v211_v46  ;;  %v323_v46 = vrot.slane %v74_v31, %v251_v6  ;;  %v333_v53 = vcombine.low %v311_v43, %v315_v44  ;;  %v340_v60 = vrot.slane %v332_v52, %v1294_v5  ;;  %v437_v31 = vld [vmem:[#allocation8 + $0x78] sm:$0xff]  ;;  %v459_v51 = vld [vmem:[#allocation8 + $0x128] sm:$0xff] }
 0x10d   :  { %v294_v4 = vcombine.low %v286_v58, %v293_v59  ;;  %v441_v43 = vld [vmem:[#allocation8 + $0x98] sm:$0xff]  ;;  %v1027_v56 = vcombine.high %v455_v50, %v459_v51  ;;  %v463_v58 = vld [vmem:[#allocation8 + $0x148] sm:$0xff] }
 0x10e   :  { %v349_v54 = vcombine.low %v319_v45, %v323_v46  ;;  %v347_v61 = vrot.slane %v333_v53, %v1294_v5  ;;  %v445_v44 = vld [vmem:[#allocation8 + $0xb8] sm:$0xff]  ;;  %v467_v59 = vld [vmem:[#allocation8 + $0x168] sm:$0xff] }
 0x10f   :  { %v1015_v3 = vcombine.high %v441_v43, %v445_v44  ;;  %v457_v52 = vld [vmem:[#allocation8 + $0x118] sm:$0xff] }
 0x110   :  { %v357_v62 = vrot.slane %v349_v54, %v1294_v5  ;;  %v348_v9 = vcombine.low %v340_v60, %v347_v61  ;;  %v461_v53 = vld [vmem:[#allocation8 + $0x138] sm:$0xff]  ;;  %v1018_v54 = vcombine.low %v447_v11, %v451_v12 }
 0x111   :  { %v1031_v57 = vcombine.high %v457_v52, %v461_v53  ;;  %v465_v60 = vld [vmem:[#allocation8 + $0x158] sm:$0xff] }
 0x112   :  { %v365_v14 = vcombine.low %v357_v62, %v364_v63  ;;  %v469_v61 = vld [vmem:[#allocation8 + $0x178] sm:$0xff]  ;;  %v1026_v62 = vcombine.low %v455_v50, %v459_v51  ;;  %v1030_v63 = vcombine.low %v457_v52, %v461_v53 }
 0x199   :  { %v213_v28 = vpop.xlane.xlu0 %212 }
 0x19a   :  { %v214_v30 = vmul.f32 0.0009765625, %v213_v28 }
 0x19c   :  { %v215_v34 = vadd.f32 1e-05, %v214_v30  ;;  %v433_v30 = vld [vmem:[#allocation8 + $0x58] sm:$0xff] }
 0x19d   :  { %v1007_v39 = vcombine.high %v433_v30, %v437_v31  ;;  %v1006_v46 = vcombine.low %v433_v30, %v437_v31 }
 0x19e   :  { %1077 = vrsqrt.f32 %v215_v34 }
 0x1a8   :  { %v1078_v0 = vpop.eup %1077 }
 0x1a9   :  { %v224_v1 = vrot.slane %v1078_v0, %v1319_v16  ;;  %v1035_v0 = vcombine.high %v463_v58, %v467_v59 }
 0x1ab   :  { %v226_v8 = vmul.f32 %v224_v1, %v1323_v20  ;;  %v227_v10 = vmul.f32 %v224_v1, %v1326_v21  ;;  %v435_v21 = vld [vmem:[#allocation8 + $0x68] sm:$0xff]  ;;  %v1039_v1 = vcombine.high %v465_v60, %v469_v61 }
 0x1ac   :  { %v1003_v38 = vcombine.high %v431_v29, %v435_v21  ;;  %v1002_v45 = vcombine.low %v431_v29, %v435_v21 }
 0x1ad   :  { %v297_v19 = vmul.f32 %v277_v2, %v226_v8  ;;  %v298_v22 = vmul.f32 %v294_v4, %v227_v10  ;;  %v471_v2 = vld [vmem:[#allocation8 + $0x188] sm:$0xff]  ;;  %v473_v8 = vld [vmem:[#allocation8 + $0x198] sm:$0xff]  ;;  %v1034_v10 = vcombine.low %v463_v58, %v467_v59 }
 0x1ae   :  { %v475_v4 = vld [vmem:[#allocation8 + $0x1a8] sm:$0xff] }
 0x1af   :  { %v368_v23 = vadd.f32 %v348_v9, %v297_v19  ;;  %v369_v24 = vadd.f32 %v365_v14, %v298_v22  ;;  %v477_v9 = vld [vmem:[#allocation8 + $0x1b8] sm:$0xff]  ;;  %v1038_v14 = vcombine.low %v465_v60, %v469_v61  ;;  %v1043_v19 = vcombine.high %v471_v2, %v475_v4 }
 0x1b0   :  { %v1047_v22 = vcombine.high %v473_v8, %v477_v9 }
 0x1b1   :  { %v372_v25 = vcombine.high %v368_v23, %v368_v23  ;;  %v379_v26 = vrot.slane %v368_v23, %v1294_v5  ;;  %v389_v27 = vcombine.high %v369_v24, %v369_v24  ;;  %v396_v28 = vrot.slane %v369_v24, %v1294_v5  ;;  %v479_v23 = vld [vmem:[#allocation8 + $0x1c8] sm:$0xff] }
 0x1b2   :  { %v483_v24 = vld [vmem:[#allocation8 + $0x1e8] sm:$0xff] }
 0x1b3   :  { %v387_v6 = vcombine.high %v379_v26, %v379_v26  ;;  %v404_v16 = vcombine.high %v396_v28, %v396_v28  ;;  %v1382_v7 = vrot.slane %v372_v25, %v1294_v5  ;;  %v1385_v20 = vrot.slane %v389_v27, %v1294_v5  ;;  %v481_v25 = vld [vmem:[#allocation8 + $0x1d8] sm:$0xff] }
 0x1b4   :  { %v414_v34 = vpack.c.bf16 %v379_v26, %v379_v26  ;;  %v418_v35 = vpack.c.bf16 %v396_v28, %v396_v28  ;;  %v485_v26 = vld [vmem:[#allocation8 + $0x1f8] sm:$0xff]  ;;  %v1042_v27 = vcombine.low %v471_v2, %v475_v4  ;;  %v1046_v28 = vcombine.low %v473_v8, %v477_v9 }
 0x1b5   :  { %v415_v32 = vpack.c.bf16 %v387_v6, %v387_v6  ;;  %v419_v33 = vpack.c.bf16 %v404_v16, %v404_v16  ;;  %v388_v36 = vcombine.high %v1382_v7, %v1382_v7  ;;  %v405_v37 = vcombine.high %v1385_v20, %v1385_v20 }
 0x1b6   :  { %v1051_v6 = vcombine.high %v479_v23, %v483_v24  ;;  %v1055_v16 = vcombine.high %v481_v25, %v485_v26  ;;  %v1050_v29 = vcombine.low %v479_v23, %v483_v24  ;;  %v1054_v21 = vcombine.low %v481_v25, %v485_v26 }
 0x1b7   :  { %844 = vmatprep.mubr.bf16.mxu1 %v415_v32  ;;  %924 = vmatprep.mubr.bf16.mxu0 %v419_v33  ;;  %v417_v5 = vpack.c.bf16 %v388_v36, %v388_v36  ;;  %v421_v40 = vpack.c.bf16 %v405_v37, %v405_v37  ;;  %v416_v30 = vpack.c.bf16 %v1382_v7, %v1382_v7  ;;  %v991_v32 = vld [vmem:[%s1420_s4] ss:$0 sm:$0xff] }
 0x1b8   :  { %845 = vmatmul.mubr.bf16.vlgmr.msra.gmra.mrb[0].mxu1 %v414_v34  ;;  %925 = vmatmul.mubr.bf16.vlgmr.msra.gmra.mrb[0].mxu0 %v418_v35  ;;  %v420_v31 = vpack.c.bf16 %v1385_v20, %v1385_v20 }
 0x1b9   :  { %853 = vmatpush1.bf16.xpose.msra.mxu1 %v994_v17  ;;  %933 = vmatpush1.bf16.xpose.msra.mxu0 %v998_v18  ;;  %v1010_v17 = vcombine.low %v439_v41, %v443_v42  ;;  %v1014_v18 = vcombine.low %v441_v43, %v445_v44 }
 0x1ba   :  { %884 = vmatprep.mubr.bf16.mxu1 %v417_v5  ;;  %964 = vmatprep.mubr.bf16.mxu0 %v421_v40 }
 0x1bb   :  { %854 = vmatprep.subr.bf16.mxu1 %v1003_v38  ;;  %934 = vmatprep.subr.bf16.mxu0 %v1007_v39 }
 0x1c1   :  { %855 = vmatpush1.bf16.xpose.msra.mxu1 %v1002_v45  ;;  %935 = vmatpush1.bf16.xpose.msra.mxu0 %v1006_v46 }
 0x1c2   :  { %856 = vmatprep.subr.bf16.mxu1 %v1011_v47  ;;  %936 = vmatprep.subr.bf16.mxu0 %v1015_v3 }
 0x1c9   :  { %857 = vmatpush1.bf16.xpose.msra.mxu1 %v1010_v17  ;;  %937 = vmatpush1.bf16.xpose.msra.mxu0 %v1014_v18 }
 0x1ca   :  { %858 = vmatprep.subr.bf16.mxu1 %v1019_v48  ;;  %938 = vmatprep.subr.bf16.mxu0 %v1023_v49 }
 0x1d1   :  { %859 = vmatpush1.bf16.xpose.msra.mxu1 %v1018_v54  ;;  %939 = vmatpush1.bf16.xpose.msra.mxu0 %v1022_v55 }
 0x1d2   :  { %860 = vmatprep.subr.bf16.mxu1 %v1027_v56  ;;  %940 = vmatprep.subr.bf16.mxu0 %v1031_v57 }
 0x1d9   :  { %861 = vmatpush1.bf16.xpose.msra.mxu1 %v1026_v62  ;;  %941 = vmatpush1.bf16.xpose.msra.mxu0 %v1030_v63 }
 0x1da   :  { %862 = vmatprep.subr.bf16.mxu1 %v1035_v0  ;;  %942 = vmatprep.subr.bf16.mxu0 %v1039_v1 }
 0x1e1   :  { %863 = vmatpush1.bf16.xpose.msra.mxu1 %v1034_v10  ;;  %943 = vmatpush1.bf16.xpose.msra.mxu0 %v1038_v14 }
 0x1e2   :  { %864 = vmatprep.subr.bf16.mxu1 %v1043_v19  ;;  %944 = vmatprep.subr.bf16.mxu0 %v1047_v22 }
 0x1e9   :  { %865 = vmatpush1.bf16.xpose.msra.mxu1 %v1042_v27  ;;  %945 = vmatpush1.bf16.xpose.msra.mxu0 %v1046_v28 }
 0x1ea   :  { %866 = vmatprep.subr.bf16.mxu1 %v1051_v6  ;;  %946 = vmatprep.subr.bf16.mxu0 %v1055_v16 }
 0x1f1   :  { %867 = vmatpush1.bf16.xpose.msra.mxu1 %v1050_v29  ;;  %947 = vmatpush1.bf16.xpose.msra.mxu0 %v1054_v21 }
 0x1f8   :  { %885 = vmatmul.mubr.bf16.vlgmr.msra.gmra.mrb[0].mxu1 %v416_v30  ;;  %965 = vmatmul.mubr.bf16.vlgmr.msra.gmra.mrb[0].mxu0 %v420_v31 }
 0x2cb   :  { %v886_v33 = vpop.f32.mrb[0].mxu1  ;;  %v966_v34 = vpop.f32.mrb[0].mxu0 }
 0x2cc   :  { %v1056_v35 = vadd.f32 %v991_v32, %v886_v33  ;;  %v888_v36 = vpop.f32.mrb[1].mxu1  ;;  %v968_v37 = vpop.f32.mrb[1].mxu0 }
 0x2cd   :  { %v889_v38 = vpop.f32.mrb[2].mxu1  ;;  %v969_v39 = vpop.f32.mrb[2].mxu0 }
 0x2ce   :  { %v1057_v5 = vadd.f32 %v1056_v35, %v966_v34  ;;  %v890_v7 = vpop.f32.mrb[3].mxu1  ;;  %v970_v40 = vpop.f32.mrb[3].mxu0 }
 0x2d0   :  { %v972_v41 = vmax.f32 %v1057_v5, 0.0 }
 0x2d2   :  { %973 = vst [vmem:[#allocation10] sm:$0x3] %v972_v41 }
 0x2d3   :  { %1178 = shalt.err (!%p1175_p8)
}
 0x2d4   :  { %s1179_s19 = scalar_lea.hbm %s1421_s5, 32 }
 0x2d5   :  { %p1180_p9 = scmp.ne.s32.totalorder %s1421_s5, %s1179_s19  ;;  %p1183_p10 = scmp.lt.u32.totalorder %s1179_s19, %s1421_s5 }
 0x2d7   :  { %p1185_p11 = pnand %p1183_p10, %p1180_p9 }
 0x2d9   :  { %1188 = shalt.err (!%p1185_p11)
}
 0x2da   :  { %983 = dma.vmem_to_hbm [thread:$0]  %s981_s16, 32, %s1421_s5, [#allocation4]  }
 0x2db   :  { %1195 = dma.done.wait [#allocation4], 32  }
 0x2dc   :  { %1196 = vsyncadd [#allocation4], 4294967264 }
 0x2dd   :  { %987 = vsyncpa [#allocation3], 1 }
 0x2de   :  { %988 = vsyncpa [#allocation6], 1 }
 0x2df   :  { %989 = vsyncpa [#allocation9], 1 }
 0x2e0   :  { %990 = vsyncpa [#allocation4], 1 }

</bundles_post_ra>
